<compile_context>
chip_gen: v7x
topology: tpu7x:2x2x1
jax: 0.10.0
libtpu: 0.0.40
codegen_flags: <defaults>
</compile_context>

<pallas_src>
import functools

import jax
import jax.numpy as jnp
from jax import lax
from jax.experimental import pallas as pl
from jax.experimental.pallas import tpu as pltpu


def _round_up(n, m):
    return ((n + m - 1) // m) * m


def _pad_dim(n):
    # 128-lane minimum; genuinely large dims padded to 256 multiples so v6e/v7x
    # 256-wide MXUs see full-width K/N operands (128 is already full width on v5e).
    return _round_up(n, 256) if n >= 256 else _round_up(n, 128)


# ------------------------------ fused MLP kernel ---------------------------- #

def _mlp_kernel(x_ref, w_in_ref, b_in_ref, w_hid_ref, b_hid_ref,
                w_out_ref, b_out_ref, o_ref, *, layer_num, valid_out):
    # input layer: x @ W_in + b_in, ReLU  (bf16 MXU operands, f32 accumulate)
    h = jnp.dot(x_ref[...].astype(jnp.bfloat16), w_in_ref[...],
                preferred_element_type=jnp.float32)
    h = jnp.maximum(h + b_in_ref[...], 0.0).astype(jnp.bfloat16)

    # hidden layers: bf16 activation carried in registers (no VMEM round-trip),
    # fully unrolled so the LLO scheduler sees back-to-back matmuls.
    def body(l, h):
        y = jnp.dot(h, w_hid_ref[l], preferred_element_type=jnp.float32)
        return jnp.maximum(y + b_hid_ref[l], 0.0).astype(jnp.bfloat16)

    h = lax.fori_loop(0, layer_num, body, h, unroll=True)

    # output layer + softmax over feature dim (mask padded lanes; exact divide)
    y = jnp.dot(h, w_out_ref[...], preferred_element_type=jnp.float32)
    y = y + b_out_ref[...]
    col = lax.broadcasted_iota(jnp.int32, y.shape, 1)
    y = jnp.where(col < valid_out, y, jnp.float32(-1e30))  # exp -> 0 on padded lanes
    m = jnp.max(y, axis=-1, keepdims=True)
    e = jnp.exp(y - m)
    denom = jnp.sum(e, axis=-1, keepdims=True)
    o_ref[...] = (e / denom).astype(o_ref.dtype)


# ------------------------------ parameter handling -------------------------- #

def init_params(key, input_size, hidden_size, output_size, layer_num):
    """Deterministic init mimicking nn.Linear default (uniform +/- 1/sqrt(fan_in)).
    Weights are stored as [in_features, out_features] (PyTorch W.T)."""
    def linear_init(k, fan_in, fan_out):
        kw, kb = jax.random.split(k)
        bound = 1.0 / jnp.sqrt(jnp.float32(fan_in))
        w = jax.random.uniform(kw, (fan_in, fan_out), jnp.float32, -bound, bound)
        b = jax.random.uniform(kb, (1, fan_out), jnp.float32, -bound, bound)
        return w, b

    keys = jax.random.split(key, layer_num + 2)
    return {
        "in": linear_init(keys[0], input_size, hidden_size),
        "hid": [linear_init(keys[1 + i], hidden_size, hidden_size)
                for i in range(layer_num)],
        "out": linear_init(keys[layer_num + 1], hidden_size, output_size),
    }


def pack_params(params, input_size, hidden_size, output_size, layer_num):
    """Pad feature dims lane-dense, stack hidden layers, cast weights to bf16.
    Biases stay f32 (added after the f32-accumulated matmul)."""
    Ip, Hp, Op = _pad_dim(input_size), _pad_dim(hidden_size), _pad_dim(output_size)
    L = max(layer_num, 1)

    def pad2(a, r, c):
        return jnp.pad(a, ((0, r - a.shape[0]), (0, c - a.shape[1])))

    w_in, b_in = params["in"]
    w_out, b_out = params["out"]

    if layer_num > 0:
        w_hid = jnp.stack([pad2(w, Hp, Hp) for (w, _) in params["hid"]])
        b_hid = jnp.stack([pad2(b, 1, Hp) for (_, b) in params["hid"]])
    else:  # dummy (never read: fori_loop trip count is 0)
        w_hid = jnp.zeros((L, Hp, Hp), jnp.float32)
        b_hid = jnp.zeros((L, 1, Hp), jnp.float32)

    return {
        "w_in": pad2(w_in, Ip, Hp).astype(jnp.bfloat16),
        "b_in": pad2(b_in, 1, Hp),
        "w_hid": w_hid.astype(jnp.bfloat16),
        "b_hid": b_hid,
        "w_out": pad2(w_out, Hp, Op).astype(jnp.bfloat16),
        "b_out": pad2(b_out, 1, Op),
    }


# --------------------------------- forward ---------------------------------- #

def make_mlp_forward(input_size, hidden_size, output_size, layer_num,
                     batch_tile=512, single_buffer_weights=None):
    Ip, Hp, Op = _pad_dim(input_size), _pad_dim(hidden_size), _pad_dim(output_size)
    L = max(layer_num, 1)

    kernel = functools.partial(_mlp_kernel, layer_num=layer_num,
                               valid_out=output_size)

    # Resident parameter bytes (weights bf16, biases f32).
    weight_bytes = 2 * (Ip * Hp + L * Hp * Hp + Hp * Op)
    bias_bytes = 4 * (Hp + L * Hp + Op)
    wb_bytes = weight_bytes + bias_bytes

    # Constant-index blocks never change across the batch grid; double-buffering
    # them only doubles VMEM.  Only switch to single-buffering when the weights
    # are large enough for it to matter (keeps the toy path on default buffering).
    if single_buffer_weights is None:
        single_buffer_weights = wb_bytes >= (8 << 20)

    def const_spec(shape):
        n = len(shape)
        if single_buffer_weights:
            return pl.BlockSpec(shape, lambda i: (0,) * n,
                                pipeline_mode=pl.Buffered(1))
        return pl.BlockSpec(shape, lambda i: (0,) * n)

    def forward(packed, x):
        B = x.shape[0]
        # Large batch tile to amortize per-step overhead / fill MXU M dim...
        tile_b = min(batch_tile, _round_up(B, 8))
        # ...but keep >= 2 grid steps when B > 8 so v7x's 2nd TensorCore gets work.
        if B > 8:
            tile_b = min(tile_b, _round_up((B + 1) // 2, 8))
        Bp = _round_up(B, tile_b)
        xp = jnp.pad(x, ((0, Bp - B), (0, Ip - input_size)))

        # VMEM budget: weight slabs (1x or 2x buffered) + double-buffered x/out tiles.
        w_mult = 1 if single_buffer_weights else 2
        io_bytes = 4 * 2 * tile_b * (Ip + Op)
        vmem_limit = max(16 << 20,
                         min(64 << 20, int(1.5 * (w_mult * wb_bytes + io_bytes)) + (2 << 20)))

        out = pl.pallas_call(
            kernel,
            out_shape=jax.ShapeDtypeStruct((Bp, Op), jnp.float32),
            grid_spec=pltpu.PrefetchScalarGridSpec(
                num_scalar_prefetch=0,
                grid=(Bp // tile_b,),
                in_specs=[
                    pl.BlockSpec((tile_b, Ip), lambda i: (i, 0)),  # x tile
                    const_spec((Ip, Hp)),                          # w_in
                    const_spec((1, Hp)),                           # b_in
                    const_spec((L, Hp, Hp)),                       # stacked w_hid
                    const_spec((L, 1, Hp)),                        # stacked b_hid
                    const_spec((Hp, Op)),                          # w_out
                    const_spec((1, Op)),                           # b_out
                ],
                out_specs=pl.BlockSpec((tile_b, Op), lambda i: (i, 0)),
            ),
            compiler_params=pltpu.CompilerParams(
                dimension_semantics=("parallel",),
                vmem_limit_bytes=vmem_limit,
            ),
        )(xp, packed["w_in"], packed["b_in"], packed["w_hid"],
          packed["b_hid"], packed["w_out"], packed["b_out"])

        # Slice only when padding was actually added (avoids an extra HBM pass
        # in the unpadded case; consumers can also take the padded array directly).
        if Bp == B and Op == output_size:
            return out
        return out[:B, :output_size]

    return jax.jit(forward)


# ----------------------------------- main ------------------------------------ #

if __name__ == "__main__":
    batch = 8
    input_size = 32
    hidden_size = 32
    output_size = 16
    layer_num = 2

    key = jax.random.PRNGKey(0)
    k_params, k_x, k_x2 = jax.random.split(key, 3)

    params = init_params(k_params, input_size, hidden_size, output_size, layer_num)
    packed = pack_params(params, input_size, hidden_size, output_size, layer_num)
    forward = make_mlp_forward(input_size, hidden_size, output_size, layer_num)

    # pure-JAX f32 reference of the PyTorch forward
    def ref_forward(p, xv):
        w, b = p["in"]
        h = jnp.maximum(xv @ w + b, 0.0)
        for (w, b) in p["hid"]:
            h = jnp.maximum(h @ w + b, 0.0)
        w, b = p["out"]
        return jax.nn.softmax(h @ w + b, axis=1)

    # --- test 1: toy batch (single grid step) ---
    x = jax.random.normal(k_x, (batch, input_size), jnp.float32)
    out = jax.block_until_ready(forward(packed, x))
    assert out.shape == (batch, output_size)
    # exact-divide softmax: rows sum to 1 to f32 rounding
    assert jnp.allclose(jnp.sum(out, axis=1), 1.0, atol=1e-4)
    ref = ref_forward(params, x)
    err = float(jnp.max(jnp.abs(out - ref)))
    assert err < 3e-2, err  # bf16 matmul operands (f32 accumulation) vs f32 reference

    # --- test 2: larger batch -> multi-step "parallel" grid + batch padding path ---
    x2 = jax.random.normal(k_x2, (100, input_size), jnp.float32)
    out2 = jax.block_until_ready(forward(packed, x2))
    assert out2.shape == (100, output_size)
    assert jnp.allclose(jnp.sum(out2, axis=1), 1.0, atol=1e-4)
    err2 = float(jnp.max(jnp.abs(out2 - ref_forward(params, x2))))
    assert err2 < 3e-2, err2

    print("KERNEL_OK")
</pallas_src>

<mosaic_0001>
module attributes {stable_mosaic.version = 11 : i64} {
  func.func @_mlp_kernel(%arg0: i32, %arg1: memref<8x128xf32, #tpu.memory_space<vmem>>, %arg2: memref<128x128xbf16, #tpu.memory_space<vmem>>, %arg3: memref<1x128xf32, #tpu.memory_space<vmem>>, %arg4: memref<2x128x128xbf16, #tpu.memory_space<vmem>>, %arg5: memref<2x1x128xf32, #tpu.memory_space<vmem>>, %arg6: memref<128x128xbf16, #tpu.memory_space<vmem>>, %arg7: memref<1x128xf32, #tpu.memory_space<vmem>>, %arg8: memref<8x128xf32, #tpu.memory_space<vmem>>) attributes {dimension_semantics = [#tpu.dimension_semantics<parallel>], iteration_bounds = array<i64: 1>, scalar_prefetch = 0 : i64, scratch_operands = 0 : i64, tpu.core_type = #tpu.core_type<tc>, window_params = [{transform_indices = @transform_0, window_bounds = array<i64: 8, 128>}, {pipeline_mode = #tpu.pipeline_mode<synchronous>, transform_indices = @transform_1, window_bounds = array<i64: 128, 128>}, {pipeline_mode = #tpu.pipeline_mode<synchronous>, transform_indices = @transform_2, window_bounds = array<i64: 1, 128>}, {pipeline_mode = #tpu.pipeline_mode<synchronous>, transform_indices = @transform_3, window_bounds = array<i64: 2, 128, 128>}, {pipeline_mode = #tpu.pipeline_mode<synchronous>, transform_indices = @transform_4, window_bounds = array<i64: 2, 1, 128>}, {pipeline_mode = #tpu.pipeline_mode<synchronous>, transform_indices = @transform_5, window_bounds = array<i64: 128, 128>}, {pipeline_mode = #tpu.pipeline_mode<synchronous>, transform_indices = @transform_6, window_bounds = array<i64: 1, 128>}, {transform_indices = @transform_7, window_bounds = array<i64: 8, 128>}]} {
    %c0 = arith.constant 0 : index
    %c0_0 = arith.constant 0 : index
    %0 = vector.load %arg1[%c0, %c0_0] : memref<8x128xf32, #tpu.memory_space<vmem>>, vector<8x128xf32>
    %1 = arith.truncf %0 : vector<8x128xf32> to vector<8x128xbf16>
    %c0_1 = arith.constant 0 : index
    %c0_2 = arith.constant 0 : index
    %2 = vector.load %arg2[%c0_1, %c0_2] : memref<128x128xbf16, #tpu.memory_space<vmem>>, vector<128x128xbf16>
    %cst = arith.constant dense<0.000000e+00> : vector<8x128xf32>
    %3 = tpu.matmul %1, %2, %cst {dimension_numbers = #tpu.dot_dimension_numbers<[1], [0], [0], [1], [0, 0, 1, 1], [], []>} : vector<8x128xbf16>, vector<128x128xbf16>, vector<8x128xf32> -> vector<8x128xf32>
    %c0_3 = arith.constant 0 : index
    %c0_4 = arith.constant 0 : index
    %4 = vector.load %arg3[%c0_3, %c0_4] : memref<1x128xf32, #tpu.memory_space<vmem>>, vector<1x128xf32>
    %5 = vector.broadcast %4 : vector<1x128xf32> to vector<8x128xf32>
    %6 = arith.addf %3, %5 : vector<8x128xf32>
    %cst_5 = arith.constant 0.000000e+00 : f32
    %7 = vector.broadcast %cst_5 : f32 to vector<8x128xf32>
    %8 = arith.maximumf %6, %7 : vector<8x128xf32>
    %9 = arith.truncf %8 : vector<8x128xf32> to vector<8x128xbf16>
    %c0_i32 = arith.constant 0 : i32
    %10 = arith.index_cast %c0_i32 : i32 to index
    %c0_6 = arith.constant 0 : index
    %c0_7 = arith.constant 0 : index
    %11 = vector.load %arg4[%10, %c0_6, %c0_7] : memref<2x128x128xbf16, #tpu.memory_space<vmem>>, vector<1x128x128xbf16>
    %12 = vector.shape_cast %11 : vector<1x128x128xbf16> to vector<128x128xbf16>
    %cst_8 = arith.constant dense<0.000000e+00> : vector<8x128xf32>
    %13 = tpu.matmul %9, %12, %cst_8 {dimension_numbers = #tpu.dot_dimension_numbers<[1], [0], [0], [1], [0, 0, 1, 1], [], []>} : vector<8x128xbf16>, vector<128x128xbf16>, vector<8x128xf32> -> vector<8x128xf32>
    %14 = arith.index_cast %c0_i32 : i32 to index
    %c0_9 = arith.constant 0 : index
    %c0_10 = arith.constant 0 : index
    %15 = vector.load %arg5[%14, %c0_9, %c0_10] : memref<2x1x128xf32, #tpu.memory_space<vmem>>, vector<1x1x128xf32>
    %16 = vector.shape_cast %15 : vector<1x1x128xf32> to vector<1x128xf32>
    %17 = vector.broadcast %16 : vector<1x128xf32> to vector<8x128xf32>
    %18 = arith.addf %13, %17 : vector<8x128xf32>
    %cst_11 = arith.constant 0.000000e+00 : f32
    %19 = vector.broadcast %cst_11 : f32 to vector<8x128xf32>
    %20 = arith.maximumf %18, %19 : vector<8x128xf32>
    %21 = arith.truncf %20 : vector<8x128xf32> to vector<8x128xbf16>
    %c1_i32 = arith.constant 1 : i32
    %22 = arith.index_cast %c1_i32 : i32 to index
    %c0_12 = arith.constant 0 : index
    %c0_13 = arith.constant 0 : index
    %23 = vector.load %arg4[%22, %c0_12, %c0_13] : memref<2x128x128xbf16, #tpu.memory_space<vmem>>, vector<1x128x128xbf16>
    %24 = vector.shape_cast %23 : vector<1x128x128xbf16> to vector<128x128xbf16>
    %cst_14 = arith.constant dense<0.000000e+00> : vector<8x128xf32>
    %25 = tpu.matmul %21, %24, %cst_14 {dimension_numbers = #tpu.dot_dimension_numbers<[1], [0], [0], [1], [0, 0, 1, 1], [], []>} : vector<8x128xbf16>, vector<128x128xbf16>, vector<8x128xf32> -> vector<8x128xf32>
    %26 = arith.index_cast %c1_i32 : i32 to index
    %c0_15 = arith.constant 0 : index
    %c0_16 = arith.constant 0 : index
    %27 = vector.load %arg5[%26, %c0_15, %c0_16] : memref<2x1x128xf32, #tpu.memory_space<vmem>>, vector<1x1x128xf32>
    %28 = vector.shape_cast %27 : vector<1x1x128xf32> to vector<1x128xf32>
    %29 = vector.broadcast %28 : vector<1x128xf32> to vector<8x128xf32>
    %30 = arith.addf %25, %29 : vector<8x128xf32>
    %cst_17 = arith.constant 0.000000e+00 : f32
    %31 = vector.broadcast %cst_17 : f32 to vector<8x128xf32>
    %32 = arith.maximumf %30, %31 : vector<8x128xf32>
    %33 = arith.truncf %32 : vector<8x128xf32> to vector<8x128xbf16>
    %c2_i32 = arith.constant 2 : i32
    %c0_18 = arith.constant 0 : index
    %c0_19 = arith.constant 0 : index
    %34 = vector.load %arg6[%c0_18, %c0_19] : memref<128x128xbf16, #tpu.memory_space<vmem>>, vector<128x128xbf16>
    %cst_20 = arith.constant dense<0.000000e+00> : vector<8x128xf32>
    %35 = tpu.matmul %33, %34, %cst_20 {dimension_numbers = #tpu.dot_dimension_numbers<[1], [0], [0], [1], [0, 0, 1, 1], [], []>} : vector<8x128xbf16>, vector<128x128xbf16>, vector<8x128xf32> -> vector<8x128xf32>
    %c0_21 = arith.constant 0 : index
    %c0_22 = arith.constant 0 : index
    %36 = vector.load %arg7[%c0_21, %c0_22] : memref<1x128xf32, #tpu.memory_space<vmem>>, vector<1x128xf32>
    %37 = vector.broadcast %36 : vector<1x128xf32> to vector<8x128xf32>
    %38 = arith.addf %35, %37 : vector<8x128xf32>
    %39 = tpu.iota {dimensions = array<i32: 1>} : vector<8x128xi32>
    %c16_i32 = arith.constant 16 : i32
    %40 = vector.broadcast %c16_i32 : i32 to vector<8x128xi32>
    %41 = arith.cmpi slt, %39, %40 : vector<8x128xi32>
    %cst_23 = arith.constant -1.000000e+30 : f32
    %42 = vector.broadcast %cst_23 : f32 to vector<8x128xf32>
    %43 = arith.select %41, %38, %42 : vector<8x128xi1>, vector<8x128xf32>
    %cst_24 = arith.constant dense<0xFF800000> : vector<8xf32>
    %44 = vector.multi_reduction <maximumf>, %43, %cst_24 [1] : vector<8x128xf32> to vector<8xf32>
    %45 = vector.shape_cast %44 : vector<8xf32> to vector<8x1xf32>
    %46 = vector.broadcast %45 : vector<8x1xf32> to vector<8x128xf32>
    %47 = arith.subf %43, %46 : vector<8x128xf32>
    %48 = math.exp %47 : vector<8x128xf32>
    %cst_25 = arith.constant dense<0.000000e+00> : vector<8xf32>
    %49 = vector.multi_reduction <add>, %48, %cst_25 [1] : vector<8x128xf32> to vector<8xf32>
    %50 = vector.shape_cast %49 : vector<8xf32> to vector<8x1xf32>
    %51 = vector.broadcast %50 : vector<8x1xf32> to vector<8x128xf32>
    %52 = arith.divf %48, %51 : vector<8x128xf32>
    %c0_26 = arith.constant 0 : index
    %c0_27 = arith.constant 0 : index
    %53 = vector.load %arg8[%c0_26, %c0_27] : memref<8x128xf32, #tpu.memory_space<vmem>>, vector<8x128xf32>
    tpu.vector_store %arg8[%c0_26, %c0_27], %52 {strides = array<i32>} : memref<8x128xf32, #tpu.memory_space<vmem>>, vector<8x128xf32>,
    return
  }
  func.func @transform_0(%arg0: i32) -> (i32, i32) {
    %c0_i32 = arith.constant 0 : i32
    %c0_i32_0 = arith.constant 0 : i32
    return %arg0, %c0_i32 : i32, i32
  }
  func.func @transform_1(%arg0: i32) -> (i32, i32) {
    %c0_i32 = arith.constant 0 : i32
    %c0_i32_0 = arith.constant 0 : i32
    %c0_i32_1 = arith.constant 0 : i32
    return %c0_i32, %c0_i32_0 : i32, i32
  }
  func.func @transform_2(%arg0: i32) -> (i32, i32) {
    %c0_i32 = arith.constant 0 : i32
    %c0_i32_0 = arith.constant 0 : i32
    %c0_i32_1 = arith.constant 0 : i32
    return %c0_i32, %c0_i32_0 : i32, i32
  }
  func.func @transform_3(%arg0: i32) -> (i32, i32, i32) {
    %c0_i32 = arith.constant 0 : i32
    %c0_i32_0 = arith.constant 0 : i32
    %c0_i32_1 = arith.constant 0 : i32
    %c0_i32_2 = arith.constant 0 : i32
    return %c0_i32, %c0_i32_0, %c0_i32_1 : i32, i32, i32
  }
  func.func @transform_4(%arg0: i32) -> (i32, i32, i32) {
    %c0_i32 = arith.constant 0 : i32
    %c0_i32_0 = arith.constant 0 : i32
    %c0_i32_1 = arith.constant 0 : i32
    %c0_i32_2 = arith.constant 0 : i32
    return %c0_i32, %c0_i32_0, %c0_i32_1 : i32, i32, i32
  }
  func.func @transform_5(%arg0: i32) -> (i32, i32) {
    %c0_i32 = arith.constant 0 : i32
    %c0_i32_0 = arith.constant 0 : i32
    %c0_i32_1 = arith.constant 0 : i32
    return %c0_i32, %c0_i32_0 : i32, i32
  }
  func.func @transform_6(%arg0: i32) -> (i32, i32) {
    %c0_i32 = arith.constant 0 : i32
    %c0_i32_0 = arith.constant 0 : i32
    %c0_i32_1 = arith.constant 0 : i32
    return %c0_i32, %c0_i32_0 : i32, i32
  }
  func.func @transform_7(%arg0: i32) -> (i32, i32) {
    %c0_i32 = arith.constant 0 : i32
    %c0_i32_0 = arith.constant 0 : i32
    return %arg0, %c0_i32 : i32, i32
  }
}

</mosaic_0001>

<bundles_post_ra>
// kernel: forward.1
= control target key start
LH: loop header
LB: loop body
LE: loop exit
PB: predicated region body
PF: predicated region fallthrough
CT: control target
= control target key end

     0   :  { %12 = vsyncpa [#allocation3], 0  ;;  %s1011_s0 = inlined_call_operand.vmem [shape: f32[8,128], index: 0, kind: input, shape index: {}]   ;;  %s1012_s1 = inlined_call_operand.hbm [shape: bf16[128,128], index: 1, kind: input, shape index: {}]   ;;  %s1013_s2 = inlined_call_operand.vmem [shape: f32[1,128], index: 2, kind: input, shape index: {}]   ;;  %s1014_s3 = inlined_call_operand.hbm [shape: bf16[2,128,128], index: 3, kind: input, shape index: {}]   ;;  %s1015_s4 = inlined_call_operand.vmem [shape: f32[2,1,128], index: 4, kind: input, shape index: {}]   ;;  %s1016_s5 = inlined_call_operand.hbm [shape: bf16[128,128], index: 5, kind: input, shape index: {}]   ;;  %s1017_s6 = inlined_call_operand.vmem [shape: f32[1,128], index: 6, kind: input, shape index: {}]   ;;  %s1018_s7 = inlined_call_operand.hbm [shape: f32[8,128], index: 7, kind: output, shape index: {}]  }
   0x1   :  { %13 = vsyncpa [#allocation6], 0 }
   0x2   :  { %14 = vsyncpa [#allocation4], 0  ;;  %s844_s24 = smov [#allocation5]   ;;  %s845_s26 = smov [#allocation2]  }
   0x3   :  { %s36_s25 = sshll.u32 %s844_s24, 4  ;;  %s22_s27 = sshll.u32 %s845_s26, 4  ;;  %s37_s25 = int_to_ptr.vmem [resolvable:$true] %s36_s25  ;;  %s892_s27 = int_to_ptr.vmem [resolvable:$true] %s22_s27 }
   0x4   :  { %s750_s30 = scalar_lea.hbm %s1014_s3, 2048 }
   0x5   :  { %p751_p0 = scmp.ne.s32.totalorder %s1014_s3, %s750_s30  ;;  %p754_p1 = scmp.lt.u32.totalorder %s750_s30, %s1014_s3 }
   0x7   :  { %p756_p2 = pnand %p754_p1, %p751_p0 }
   0x9   :  { %759 = shalt.err (!%p756_p2)
}
   0xa   :  { %s760_s12 = scalar_lea.vmem %s37_s25, 2048  ;;  %p765_p4 = scmp.lt.s32.totalorder %s37_s25, %s37_s25 }
   0xb   :  { %p761_p3 = scmp.ne.s32.totalorder %s37_s25, %s760_s12  ;;  %p766_p5 = scmp.lt.s32.totalorder %s760_s12, %s760_s12 }
   0xd   :  { %p767_p6 = por %p766_p5, %p765_p4 }
   0xf   :  { %p768_p7 = pnand %p767_p6, %p761_p3 }
  0x11   :  { %771 = shalt.err (!%p768_p7)
}
  0x12   :  { %s846_s13 = smov 64   ;;  %s847_s14 = smov 4  }
  0x13   :  { %42 = dma.hbm_to_vmem [thread:$0]  %s1014_s3, 2048, %s37_s25, [#allocation6], %s846_s13, %s846_s13, %s847_s14  }
  0x14   :  { %s772_s19 = scalar_lea.hbm %s1012_s1, 1024 }
  0x15   :  { %p773_p8 = scmp.ne.s32.totalorder %s1012_s1, %s772_s19  ;;  %p776_p9 = scmp.lt.u32.totalorder %s772_s19, %s1012_s1 }
  0x17   :  { %p778_p10 = pnand %p776_p9, %p773_p8 }
  0x19   :  { %781 = shalt.err (!%p778_p10)
}
  0x1a   :  { %s782_s24 = scalar_lea.vmem %s892_s27, 1024  ;;  %p787_p12 = scmp.lt.s32.totalorder %s892_s27, %s892_s27 }
  0x1b   :  { %p783_p11 = scmp.ne.s32.totalorder %s892_s27, %s782_s24  ;;  %p788_p13 = scmp.lt.s32.totalorder %s782_s24, %s782_s24 }
  0x1d   :  { %p789_p0 = por %p788_p13, %p787_p12 }
  0x1f   :  { %p790_p1 = pnand %p789_p0, %p783_p11 }
  0x21   :  { %793 = shalt.err (!%p790_p1)
}
  0x22   :  { %28 = dma.hbm_to_vmem [thread:$0]  %s1012_s1, 1024, %s892_s27, [#allocation3], %s846_s13, %s846_s13, %s847_s14  }
  0x23   :  { %s848_s26 = smov [#allocation7]   ;;  %s794_s8 = scalar_lea.hbm %s1016_s5, 1024 }
  0x24   :  { %s50_s28 = sshll.u32 %s848_s26, 4  ;;  %p795_p2 = scmp.ne.s32.totalorder %s1016_s5, %s794_s8  ;;  %s51_s28 = int_to_ptr.vmem [resolvable:$true] %s50_s28 }
  0x25   :  { %p798_p3 = scmp.lt.u32.totalorder %s794_s8, %s1016_s5 }
  0x27   :  { %p800_p4 = pnand %p798_p3, %p795_p2 }
  0x29   :  { %803 = shalt.err (!%p800_p4)
}
  0x2a   :  { %s804_s15 = scalar_lea.vmem %s51_s28, 1024  ;;  %p809_p6 = scmp.lt.s32.totalorder %s51_s28, %s51_s28 }
  0x2b   :  { %p805_p5 = scmp.ne.s32.totalorder %s51_s28, %s804_s15  ;;  %p810_p7 = scmp.lt.s32.totalorder %s804_s15, %s804_s15 }
  0x2d   :  { %p811_p8 = por %p810_p7, %p809_p6 }
  0x2f   :  { %p812_p9 = pnand %p811_p8, %p805_p5 }
  0x31   :  { %815 = shalt.err (!%p812_p9)
}
  0x32   :  { %56 = dma.hbm_to_vmem [thread:$0]  %s1016_s5, 1024, %s51_s28, [#allocation6], %s846_s13, %s846_s13, %s847_s14  }
  0x33   :  { %838 = dma.done.wait [#allocation3], 1024  }
  0x34   :  { %839 = vsyncadd [#allocation3], 4294966272 }
  0x35   :  { %840 = dma.done.wait [#allocation6], 3072  }
  0x36   :  { %841 = vsyncadd [#allocation6], 4294964224  ;;  %v849_v0 = vmov 0.0   ;;  %vm850_vm0 = vmmov 0   ;;  %v714_v1 = vld [vmem:[#allocation2] sm:$0xff]   ;;  %v715_v2 = vld [vmem:[#allocation2 + $0x8] sm:$0xff]   ;;  %v523_v59 = vlaneseq }
  0x37   :  { %626 = vmatprep.subr.bf16.mxu0 %v849_v0  ;;  %642 = vmatprep.mubr.msk.bf16.mxu0 %vm850_vm0, %v849_v0  ;;  %v716_v3 = vld [vmem:[#allocation2 + $0x10] sm:$0xff]   ;;  %v722_v4 = vld [vmem:[#allocation5] sm:$0xff]   ;;  %v717_v5 = vld [vmem:[#allocation2 + $0x18] sm:$0xff]  }
  0x38   :  { %646 = vmatprep.subr.bf16.mxu1 %v849_v0  ;;  %662 = vmatprep.mubr.msk.bf16.mxu1 %vm850_vm0, %v849_v0  ;;  %v723_v6 = vld [vmem:[#allocation5 + $0x8] sm:$0xff]   ;;  %v718_v7 = vld [vmem:[#allocation2 + $0x20] sm:$0xff]   ;;  %v724_v8 = vld [vmem:[#allocation5 + $0x10] sm:$0xff]   ;;  %v524_v60 = vand.u32 127, %v523_v59 }
  0x39   :  { %627 = vmatpush3.bf16.msra.mxu0 %v714_v1  ;;  %647 = vmatpush3.bf16.msra.mxu1 %v722_v4  ;;  %v719_v9 = vld [vmem:[#allocation2 + $0x28] sm:$0xff]   ;;  %v725_v10 = vld [vmem:[#allocation5 + $0x18] sm:$0xff]   ;;  %v720_v11 = vld [vmem:[#allocation2 + $0x30] sm:$0xff]  }
  0x3a   :  { %628 = vmatprep.subr.bf16.mxu0 %v849_v0  ;;  %648 = vmatprep.subr.bf16.mxu1 %v849_v0  ;;  %v726_v12 = vld [vmem:[#allocation5 + $0x20] sm:$0xff]   ;;  %v721_v13 = vld [vmem:[#allocation2 + $0x38] sm:$0xff]   ;;  %v727_v15 = vld [vmem:[#allocation5 + $0x28] sm:$0xff]   ;;  %vm525_vm1 = vcmp.lt.s32.totalorder %v524_v60, 16 }
  0x3b   :  { %v69_v14 = vld [vmem:[%s1011_s0] sm:$0xff]  ;;  %v728_v17 = vld [vmem:[#allocation5 + $0x30] sm:$0xff]   ;;  %v729_v18 = vld [vmem:[#allocation5 + $0x38] sm:$0xff]  }
  0x3c   :  { %v70_v16 = vpack.c.bf16 %v69_v14, %v69_v14  ;;  %v730_v19 = vld [vmem:[#allocation5 + $0x40] sm:$0xff]   ;;  %v731_v20 = vld [vmem:[#allocation5 + $0x48] sm:$0xff]   ;;  %v732_v21 = vld [vmem:[#allocation5 + $0x50] sm:$0xff]  }
  0x3d   :  { %629 = vmatpush3.bf16.msra.mxu0 %v715_v2  ;;  %649 = vmatpush3.bf16.msra.mxu1 %v723_v6  ;;  %v733_v22 = vld [vmem:[#allocation5 + $0x58] sm:$0xff]   ;;  %v734_v23 = vld [vmem:[#allocation5 + $0x60] sm:$0xff]   ;;  %v735_v24 = vld [vmem:[#allocation5 + $0x68] sm:$0xff]  }
  0x3e   :  { %630 = vmatprep.subr.bf16.mxu0 %v849_v0  ;;  %650 = vmatprep.subr.bf16.mxu1 %v849_v0  ;;  %v553_v25 = vld [vmem:[%s1013_s2] ss:$0 sm:$0xff]  ;;  %v736_v33 = vld [vmem:[#allocation5 + $0x70] sm:$0xff]   ;;  %v737_v34 = vld [vmem:[#allocation5 + $0x78] sm:$0xff]  }
  0x3f   :  { %v738_v35 = vld [vmem:[#allocation7] sm:$0xff]   ;;  %v739_v36 = vld [vmem:[#allocation7 + $0x8] sm:$0xff]   ;;  %v740_v37 = vld [vmem:[#allocation7 + $0x10] sm:$0xff]  }
  0x40   :  { %v741_v38 = vld [vmem:[#allocation7 + $0x18] sm:$0xff]   ;;  %v742_v39 = vld [vmem:[#allocation7 + $0x20] sm:$0xff]   ;;  %v743_v40 = vld [vmem:[#allocation7 + $0x28] sm:$0xff]  }
  0x41   :  { %631 = vmatpush3.bf16.msra.mxu0 %v716_v3  ;;  %651 = vmatpush3.bf16.msra.mxu1 %v724_v8  ;;  %v562_v41 = vld [vmem:[%s1015_s4] ss:$0 sm:$0xff]  ;;  %v744_v49 = vld [vmem:[#allocation7 + $0x30] sm:$0xff]   ;;  %v745_v50 = vld [vmem:[#allocation7 + $0x38] sm:$0xff]  }
  0x42   :  { %632 = vmatprep.subr.bf16.mxu0 %v849_v0  ;;  %652 = vmatprep.subr.bf16.mxu1 %v849_v0  ;;  %v572_v51 = vld [vmem:[%s1015_s4 + $0x1] ss:$0 sm:$0xff]  ;;  %v581_v61 = vld [vmem:[%s1017_s6] ss:$0 sm:$0xff]  ;;  %s851_s4 = smov [#allocation8]  }
  0x43   :  { %s543_s21 = sshll.u32 %s851_s4, 4  ;;  %s544_s21 = int_to_ptr.vmem [resolvable:$true] %s543_s21 }
  0x44   :  { %s816_s6 = scalar_lea.vmem %s544_s21, 128  ;;  %p821_p11 = scmp.lt.s32.totalorder %s544_s21, %s544_s21 }
  0x45   :  { %633 = vmatpush3.bf16.msra.mxu0 %v717_v5  ;;  %653 = vmatpush3.bf16.msra.mxu1 %v725_v10  ;;  %p817_p10 = scmp.ne.s32.totalorder %s544_s21, %s816_s6  ;;  %p822_p12 = scmp.lt.s32.totalorder %s816_s6, %s816_s6 }
  0x46   :  { %634 = vmatprep.subr.bf16.mxu0 %v849_v0  ;;  %654 = vmatprep.subr.bf16.mxu1 %v849_v0 }
  0x47   :  { %p823_p13 = por %p822_p12, %p821_p11 }
  0x49   :  { %635 = vmatpush3.bf16.msra.mxu0 %v718_v7  ;;  %655 = vmatpush3.bf16.msra.mxu1 %v726_v12  ;;  %p824_p0 = pnand %p823_p13, %p817_p10 }
  0x4a   :  { %636 = vmatprep.subr.bf16.mxu0 %v849_v0  ;;  %656 = vmatprep.subr.bf16.mxu1 %v849_v0 }
  0x4d   :  { %637 = vmatpush3.bf16.msra.mxu0 %v719_v9  ;;  %657 = vmatpush3.bf16.msra.mxu1 %v727_v15 }
  0x4e   :  { %638 = vmatprep.subr.bf16.mxu0 %v849_v0  ;;  %658 = vmatprep.subr.bf16.mxu1 %v849_v0 }
  0x51   :  { %639 = vmatpush3.bf16.msra.mxu0 %v720_v11  ;;  %659 = vmatpush3.bf16.msra.mxu1 %v728_v17 }
  0x52   :  { %640 = vmatprep.subr.bf16.mxu0 %v849_v0  ;;  %660 = vmatprep.subr.bf16.mxu1 %v849_v0 }
  0x55   :  { %641 = vmatpush3.bf16.msra.mxu0 %v721_v13  ;;  %661 = vmatpush3.bf16.msra.mxu1 %v729_v18 }
  0x56   :  { %666 = vmatprep.subr.bf16.mxu0 %v849_v0  ;;  %686 = vmatprep.subr.bf16.mxu1 %v849_v0 }
  0x58   :  { %643 = vmatmul.mubr.bf16.vlgmr.msra.gmra.mrb[0].mxu0 %v70_v16 }
  0x59   :  { %682 = vmatprep.mubr.msk.bf16.mxu0 %vm850_vm0, %v849_v0  ;;  %667 = vmatpush3.bf16.msra.mxu0 %v730_v19 }
  0x5a   :  { %668 = vmatprep.subr.bf16.mxu0 %v849_v0 }
  0x5d   :  { %669 = vmatpush3.bf16.msra.mxu0 %v731_v20 }
  0x5e   :  { %670 = vmatprep.subr.bf16.mxu0 %v849_v0 }
  0x61   :  { %671 = vmatpush3.bf16.msra.mxu0 %v732_v21 }
  0x62   :  { %672 = vmatprep.subr.bf16.mxu0 %v849_v0 }
  0x65   :  { %673 = vmatpush3.bf16.msra.mxu0 %v733_v22 }
  0x66   :  { %674 = vmatprep.subr.bf16.mxu0 %v849_v0 }
  0x69   :  { %675 = vmatpush3.bf16.msra.mxu0 %v734_v23 }
  0x6a   :  { %676 = vmatprep.subr.bf16.mxu0 %v849_v0 }
  0x6d   :  { %677 = vmatpush3.bf16.msra.mxu0 %v735_v24 }
  0x6e   :  { %678 = vmatprep.subr.bf16.mxu0 %v849_v0 }
  0x71   :  { %679 = vmatpush3.bf16.msra.mxu0 %v736_v33 }
  0x72   :  { %680 = vmatprep.subr.bf16.mxu0 %v849_v0 }
  0x75   :  { %681 = vmatpush3.bf16.msra.mxu0 %v737_v34 }
 0x12b   :  { %v176_v26 = vpop.f32.mrb[0].mxu0 }
 0x12c   :  { %v177_v27 = vadd.f32 %v553_v25, %v176_v26  ;;  %v644_v28 = vpop.f32.mrb[1].mxu0 }
 0x12d   :  { %v179_v29 = vpop.f32.mrb[2].mxu0 }
 0x12e   :  { %v182_v30 = vmax.f32 %v177_v27, 0.0  ;;  %v645_v31 = vpop.f32.mrb[3].mxu0 }
 0x130   :  { %v183_v32 = vpack.c.bf16 %v182_v30, %v182_v30 }
 0x132   :  { %663 = vmatmul.mubr.bf16.vlgmr.msra.gmra.mrb[0].mxu1 %v183_v32 }
 0x133   :  { %702 = vmatprep.mubr.msk.bf16.mxu1 %vm850_vm0, %v849_v0  ;;  %687 = vmatpush3.bf16.msra.mxu1 %v738_v35 }
 0x134   :  { %688 = vmatprep.subr.bf16.mxu1 %v849_v0 }
 0x137   :  { %689 = vmatpush3.bf16.msra.mxu1 %v739_v36 }
 0x138   :  { %690 = vmatprep.subr.bf16.mxu1 %v849_v0 }
 0x13b   :  { %691 = vmatpush3.bf16.msra.mxu1 %v740_v37 }
 0x13c   :  { %692 = vmatprep.subr.bf16.mxu1 %v849_v0 }
 0x13f   :  { %693 = vmatpush3.bf16.msra.mxu1 %v741_v38 }
 0x140   :  { %694 = vmatprep.subr.bf16.mxu1 %v849_v0 }
 0x143   :  { %695 = vmatpush3.bf16.msra.mxu1 %v742_v39 }
 0x144   :  { %696 = vmatprep.subr.bf16.mxu1 %v849_v0 }
 0x147   :  { %697 = vmatpush3.bf16.msra.mxu1 %v743_v40 }
 0x148   :  { %698 = vmatprep.subr.bf16.mxu1 %v849_v0 }
 0x14b   :  { %699 = vmatpush3.bf16.msra.mxu1 %v744_v49 }
 0x14c   :  { %700 = vmatprep.subr.bf16.mxu1 %v849_v0 }
 0x14f   :  { %701 = vmatpush3.bf16.msra.mxu1 %v745_v50 }
 0x205   :  { %v289_v42 = vpop.f32.mrb[0].mxu1 }
 0x206   :  { %v290_v43 = vadd.f32 %v562_v41, %v289_v42  ;;  %v664_v44 = vpop.f32.mrb[1].mxu1 }
 0x207   :  { %v292_v45 = vpop.f32.mrb[2].mxu1 }
 0x208   :  { %v295_v46 = vmax.f32 %v290_v43, 0.0  ;;  %v665_v47 = vpop.f32.mrb[3].mxu1 }
 0x20a   :  { %v296_v48 = vpack.c.bf16 %v295_v46, %v295_v46 }
 0x20c   :  { %683 = vmatmul.mubr.bf16.vlgmr.msra.gmra.mrb[4].mxu0 %v296_v48 }
 0x2df   :  { %v404_v52 = vpop.f32.mrb[4].mxu0 }
 0x2e0   :  { %v405_v53 = vadd.f32 %v572_v51, %v404_v52  ;;  %v684_v54 = vpop.f32.mrb[5].mxu0 }
 0x2e1   :  { %v407_v55 = vpop.f32.mrb[6].mxu0 }
 0x2e2   :  { %v410_v56 = vmax.f32 %v405_v53, 0.0  ;;  %v685_v57 = vpop.f32.mrb[7].mxu0 }
 0x2e4   :  { %v411_v58 = vpack.c.bf16 %v410_v56, %v410_v56 }
 0x2e6   :  { %703 = vmatmul.mubr.bf16.vlgmr.msra.gmra.mrb[4].mxu1 %v411_v58 }
 0x3b9   :  { %v517_v62 = vpop.f32.mrb[4].mxu1 }
 0x3ba   :  { %v518_v63 = vadd.f32 %v581_v61, %v517_v62  ;;  %v704_v0 = vpop.f32.mrb[5].mxu1 }
 0x3bb   :  { %v520_v1 = vpop.f32.mrb[6].mxu1 }
 0x3bc   :  { %v705_v2 = vpop.f32.mrb[7].mxu1  ;;  %v526_v3 = vsel %vm525_vm1, %v518_v63, -1e+30 }
 0x3bd   :  { %527 = vmax.xlane.f32.xlu0 %v526_v3 }
 0x44a   :  { %v528_v4 = vpop.xlane.xlu0 %527 }
 0x44b   :  { %v529_v5 = vsub.f32 %v526_v3, %v528_v4 }
 0x44d   :  { %v530_v6 = vmul.f32 1.442695, %v529_v5 }
 0x44f   :  { %746 = vpow2.f32 %v530_v6 }
 0x459   :  { %v747_v7 = vpop.eup %746 }
 0x45a   :  { %532 = vadd.xlane.f32.xlu0 %v747_v7 }
 0x4e7   :  { %v533_v8 = vpop.xlane.xlu0 %532 }
 0x4e8   :  { %748 = vrcp.f32 %v533_v8 }
 0x4f2   :  { %v749_v9 = vpop.eup %748 }
 0x4f3   :  { %v535_v10 = vmul.f32 %v749_v9, %v747_v7 }
 0x4f5   :  { %536 = vst [vmem:[#allocation8] sm:$0xff] %v535_v10 }
 0x4f6   :  { %827 = shalt.err (!%p824_p0)
}
 0x4f7   :  { %s828_s24 = scalar_lea.hbm %s1018_s7, 128 }
 0x4f8   :  { %p829_p1 = scmp.ne.s32.totalorder %s1018_s7, %s828_s24  ;;  %p832_p2 = scmp.lt.u32.totalorder %s828_s24, %s1018_s7 }
 0x4fa   :  { %p834_p3 = pnand %p832_p2, %p829_p1 }
 0x4fc   :  { %837 = shalt.err (!%p834_p3)
}
 0x4fd   :  { %546 = dma.vmem_to_hbm [thread:$0]  %s544_s21, 128, %s1018_s7, [#allocation4]  }
 0x4fe   :  { %842 = dma.done.wait [#allocation4], 128  }
 0x4ff   :  { %843 = vsyncadd [#allocation4], 4294967168 }
 0x500   :  { %550 = vsyncpa [#allocation3], 1 }
 0x501   :  { %551 = vsyncpa [#allocation6], 1 }
 0x502   :  { %552 = vsyncpa [#allocation4], 1 }

</bundles_post_ra>
